<compile_context>
chip_gen: v5e
topology: v5e:2x2
jax: 0.10.0
libtpu: 0.0.40
codegen_flags: <defaults>
</compile_context>

<pallas_src>
import jax
import jax.numpy as jnp
from jax.experimental import pallas as pl
from jax.experimental.pallas import tpu as pltpu


# Lane widths to try (largest lane-dense layout that evenly divides the
# flattened size wins — wider last dim => unmasked vst, fewer grid steps).
_LANE_CANDIDATES = (1024, 512, 256, 128)

# ~4 MiB tiles: with double-buffered input AND output that is 16 MiB of VMEM,
# safe on v5e/v6e (128 MiB) and v7x (64 MiB physical) with the explicit limit.
_TARGET_BLOCK_BYTES = 4 * 1024 * 1024

# Below one (8,128) f32 tile of work the fixed pallas_call overhead dominates;
# identity forward can just return its input.
_MIN_PALLAS_ELEMS = 8 * 128


def _copy_kernel(x_ref, o_ref):
    # Elementwise pass-through on the current VMEM tile.
    o_ref[...] = x_ref[...]


def _pallas_identity_2d(x2d: jax.Array) -> jax.Array:
    """Identity copy of a lane-dense 2-D slab [rows, lane] (lane % 128 == 0)."""
    rows, lane = x2d.shape
    itemsize = jnp.dtype(x2d.dtype).itemsize

    # Pick a block row count giving ~4 MiB tiles, rounded to a multiple of 8
    # (sublane constraint).  If the whole slab is smaller, use one full block.
    rows_per_block = max(8, (_TARGET_BLOCK_BYTES // (lane * itemsize)) // 8 * 8)
    if rows_per_block >= rows:
        block_rows = rows           # full dim -> (8,128) constraint satisfied
        grid = (1,)
    else:
        block_rows = rows_per_block
        grid = (pl.cdiv(rows, block_rows),)

    return pl.pallas_call(
        _copy_kernel,
        out_shape=jax.ShapeDtypeStruct((rows, lane), x2d.dtype),
        grid_spec=pltpu.PrefetchScalarGridSpec(
            num_scalar_prefetch=0,
            grid=grid,
            in_specs=[pl.BlockSpec((block_rows, lane), lambda i: (i, 0))],
            out_specs=pl.BlockSpec((block_rows, lane), lambda i: (i, 0)),
        ),
        # Output aliases the input buffer: no extra HBM allocation for a pure
        # identity; XLA copy-inserts only if the operand is live elsewhere.
        input_output_aliases={0: 0},
        cost_estimate=pl.CostEstimate(
            flops=0,
            transcendentals=0,
            bytes_accessed=2 * rows * lane * itemsize,
        ),
        compiler_params=pltpu.CompilerParams(
            dimension_semantics=("parallel",),
            vmem_limit_bytes=32 * 1024 * 1024,
        ),
    )(x2d)


def base_model_forward(x: jax.Array) -> jax.Array:
    """Identity forward (abstract BaseModel.forward) as a Pallas TPU kernel.

    x: [N, C, H, W] (NCHW, PyTorch convention) — any dtype/shape works.
    returns: same shape/dtype as x.
    """
    orig_shape = x.shape
    total = x.size

    # Fast path: tiny inputs — kernel launch + DMA setup would dominate.
    if total < _MIN_PALLAS_ELEMS:
        return x

    # Preferred path: flatten to a lane-dense 2-D slab with NO padding.
    for lane in _LANE_CANDIDATES:
        if total % lane == 0:
            out2d = _pallas_identity_2d(jnp.reshape(x, (total // lane, lane)))
            return jnp.reshape(out2d, orig_shape)

    # Fallback (flat size not a multiple of 128): pad to a full (8,128) tile
    # multiple, copy, slice back.  Exact for identity (padded tail discarded).
    lane, sub = 128, 8
    tile = lane * sub
    padded = pl.cdiv(total, tile) * tile
    x_flat = jnp.pad(jnp.reshape(x, (total,)), (0, padded - total))
    out2d = _pallas_identity_2d(jnp.reshape(x_flat, (padded // lane, lane)))
    out_flat = jnp.reshape(out2d, (padded,))[:total]
    return jnp.reshape(out_flat, orig_shape)


if __name__ == "__main__":
    key = jax.random.PRNGKey(0)

    # Small NCHW input consistent with a generic vision-style model input.
    x = jax.random.normal(key, (2, 4, 16, 16), dtype=jnp.float32)

    y = base_model_forward(x)          # exercises the Pallas kernel path
    y = jax.block_until_ready(y)

    assert y.shape == x.shape and y.dtype == x.dtype
    assert bool(jnp.allclose(y, x)), "identity forward mismatch (kernel path)"

    # Also check the small-input fast path.
    x_tiny = jax.random.normal(key, (1, 1, 4, 4), dtype=jnp.float32)
    y_tiny = jax.block_until_ready(base_model_forward(x_tiny))
    assert bool(jnp.allclose(y_tiny, x_tiny)), "identity forward mismatch (fast path)"

    print("KERNEL_OK")
</pallas_src>

<mosaic_0001>
module attributes {stable_mosaic.version = 11 : i64} {
  func.func @_copy_kernel(%arg0: i32, %arg1: memref<2x1024xf32, #tpu.memory_space<vmem>>, %arg2: memref<2x1024xf32, #tpu.memory_space<vmem>>) attributes {dimension_semantics = [#tpu.dimension_semantics<parallel>], iteration_bounds = array<i64: 1>, scalar_prefetch = 0 : i64, scratch_operands = 0 : i64, tpu.core_type = #tpu.core_type<tc>, window_params = [{transform_indices = @transform_0, window_bounds = array<i64: 2, 1024>}, {transform_indices = @transform_1, window_bounds = array<i64: 2, 1024>}]} {
    %c0 = arith.constant 0 : index
    %c0_0 = arith.constant 0 : index
    %0 = vector.load %arg1[%c0, %c0_0] : memref<2x1024xf32, #tpu.memory_space<vmem>>, vector<2x1024xf32>
    %c0_1 = arith.constant 0 : index
    %c0_2 = arith.constant 0 : index
    %1 = vector.load %arg2[%c0_1, %c0_2] : memref<2x1024xf32, #tpu.memory_space<vmem>>, vector<2x1024xf32>
    tpu.vector_store %arg2[%c0_1, %c0_2], %0 {strides = array<i32>} : memref<2x1024xf32, #tpu.memory_space<vmem>>, vector<2x1024xf32>,
    return
  }
  func.func @transform_0(%arg0: i32) -> (i32, i32) {
    %c0_i32 = arith.constant 0 : i32
    %c0_i32_0 = arith.constant 0 : i32
    return %arg0, %c0_i32 : i32, i32
  }
  func.func @transform_1(%arg0: i32) -> (i32, i32) {
    %c0_i32 = arith.constant 0 : i32
    %c0_i32_0 = arith.constant 0 : i32
    return %arg0, %c0_i32 : i32, i32
  }
}

</mosaic_0001>

<bundles_post_ra>
// kernel: tpu_custom_call.1
= control target key start
LH: loop header
LB: loop body
LE: loop exit
PB: predicated region body
PF: predicated region fallthrough
CT: control target
= control target key end

     0   :  { %6 = vsyncpa [#allocation3], 0  ;;  %s116_s0 = inlined_call_operand.hbm [shape: f32[2,1024], index: 0, kind: input, shape index: {}, may-alias: {0,1}]   ;;  %s117_s1 = inlined_call_operand.hbm [shape: f32[2,1024], index: 1, kind: output, shape index: {}, may-alias: {0,1}]  }
   0x1   :  { %7 = vsyncpa [#allocation4], 0  ;;  %s13_s8 = sshll.u32 %s116_s0, 4  ;;  %s98_s9 = smov [#allocation2]   ;;  %s14_s8 = int_to_ptr.hbm [resolvable:$true] %s13_s8 }
   0x2   :  { %s15_s10 = sshll.u32 %s98_s9, 4  ;;  %s16_s10 = int_to_ptr.vmem [resolvable:$true] %s15_s10 }
   0x3   :  { %18 = dma.hbm_to_vmem [thread:$0]  %s14_s8, 256, %s16_s10, [#allocation3]  }
   0x4   :  { %94 = dma.done.wait [#allocation3], 256  }
   0x5   :  { %95 = vsyncadd [#allocation3], 4294967040  ;;  %s99_s11 = smov [#allocation5]   ;;  %s34_s15 = sshll.u32 %s117_s1, 4  ;;  %v23_v0 = vld [vmem:[#allocation2] sm:$0xff]  ;;  %v24_v1 = vld [vmem:[#allocation2 + $0x8] sm:$0xff]  ;;  %s35_s15 = int_to_ptr.hbm [resolvable:$true] %s34_s15 }
   0x6   :  { %s32_s12 = sshll.u32 %s99_s11, 4  ;;  %25 = vst [vmem:[#allocation5] sm:$0xff] %v23_v0  ;;  %s33_s12 = int_to_ptr.vmem [resolvable:$true] %s32_s12 }
   0x7   :  { %26 = vst [vmem:[#allocation5 + $0x8] sm:$0xff] %v24_v1 }
   0x8   :  { %37 = dma.vmem_to_hbm [thread:$0]  %s33_s12, 256, %s35_s15, [#allocation4]  }
   0x9   :  { %96 = dma.done.wait [#allocation4], 256  }
   0xa   :  { %97 = vsyncadd [#allocation4], 4294967040 }
   0xb   :  { %42 = vsyncpa [#allocation3], 1 }
   0xc   :  { %43 = vsyncpa [#allocation4], 1 }

</bundles_post_ra>
